<compile_context>
chip_gen: v7x
topology: tpu7x:2x2x1
jax: 0.10.0
libtpu: 0.0.40
codegen_flags: <defaults>
</compile_context>

<pallas_src>
import functools

import jax
import jax.numpy as jnp
from jax import lax
from jax.experimental import pallas as pl
from jax.experimental.pallas import tpu as pltpu


def _cdiv(a, b):
    return -(-a // b)


def _is_small_nonneg_int(g, limit=16):
    try:
        gf = float(g)
    except (TypeError, ValueError):
        return False
    return 0.0 <= gf <= limit and gf.is_integer()


def _int_pow(base, n):
    """base ** n for a small non-negative Python int n, using VPU multiplies only."""
    if n == 0:
        return jnp.ones_like(base)
    result = None
    acc = base
    while n:
        if n & 1:
            result = acc if result is None else result * acc
        n >>= 1
        if n:
            acc = acc * acc
    return result


# --------------------------------------------------------------------------- #
# Element-wise loss (shared by both kernel variants)
# --------------------------------------------------------------------------- #
def _asl_elementwise(x, y_raw, *, gamma_neg, gamma_pos, clip, eps, hard_labels,
                     extra_valid=None):
    """Per-element asymmetric loss; invalid targets (NaN / ==2 / out-of-bounds) -> 0."""
    x = x.astype(jnp.float32)
    y_raw = y_raw.astype(jnp.float32)

    valid = jnp.logical_and(y_raw == y_raw, y_raw != 2.0)   # ~isnan(y) & (y != 2)
    if extra_valid is not None:
        valid = jnp.logical_and(valid, extra_valid)
    y = jnp.where(valid, y_raw, 0.0)                        # keep intermediates finite

    # sigmoid: EUP exp + approximate EUP reciprocal (cheaper than refined f32 divide)
    xs_pos = pl.reciprocal(1.0 + jnp.exp(-x), approx=True)
    xs_neg = 1.0 - xs_pos
    if clip is not None and clip > 0:
        xs_neg = jnp.minimum(xs_neg + clip, 1.0)            # (xs_neg + clip).clamp(max=1)

    use_focal = (gamma_neg > 0) or (gamma_pos > 0)

    if hard_labels:
        # Targets are {0,1} (plus NaN / 2 "ignore"): fuse the two logs into one
        # select+log, and use an integer multiply chain for the focal weight.
        is_pos = y > 0.5
        sel = jnp.where(is_pos, xs_pos, xs_neg)             # == pt for hard labels
        loss = jnp.log(jnp.maximum(sel, eps))
        if use_focal:
            base = 1.0 - sel
            if _is_small_nonneg_int(gamma_pos) and _is_small_nonneg_int(gamma_neg):
                w = jnp.where(is_pos,
                              _int_pow(base, int(float(gamma_pos))),
                              _int_pow(base, int(float(gamma_neg))))
            else:
                g = jnp.where(is_pos, jnp.float32(gamma_pos), jnp.float32(gamma_neg))
                # pow(b, g) = exp(g*log(b)); clamp b away from 0 so log stays finite.
                w = jnp.exp(g * jnp.log(jnp.maximum(base, 1e-30)))
            loss = loss * w
    else:
        # Exact formulation of the reference module (supports soft targets).
        los_pos = y * jnp.log(jnp.maximum(xs_pos, eps))
        los_neg = (1.0 - y) * jnp.log(jnp.maximum(xs_neg, eps))
        loss = los_pos + los_neg
        if use_focal:
            pt = xs_pos * y + xs_neg * (1.0 - y)
            one_sided_gamma = gamma_pos * y + gamma_neg * (1.0 - y)
            # Note: fractional gamma with pt->1 gives ~1e-30**g instead of exact 0.
            base = jnp.maximum(1.0 - pt, 1e-30)
            loss = loss * jnp.exp(one_sided_gamma * jnp.log(base))

    return jnp.where(valid, loss, 0.0)


# --------------------------------------------------------------------------- #
# Kernels
# --------------------------------------------------------------------------- #
def _asl_kernel_single(x_ref, y_ref, out_ref, **hp):
    """Whole problem resident in VMEM; single invocation, no grid."""
    loss = _asl_elementwise(x_ref[...], y_ref[...], **hp)
    per_row = jnp.sum(loss, axis=1, keepdims=True)            # lane reduce
    out_ref[...] = -jnp.sum(per_row, axis=0, keepdims=True)   # sublane reduce


def _asl_kernel_tiled(x_ref, y_ref, out_ref, acc_ref, *, rows, cols, row_tile,
                      col_tile, mask_rows, mask_cols, **hp):
    """Streamed tiles; per-split resident (1,1) accumulator; masked ragged tiles."""
    c = pl.program_id(0)            # megacore split (parallel)
    i = pl.program_id(1)            # row block within split (reduction)
    j = pl.program_id(2)            # col block (reduction)

    @pl.when(jnp.logical_and(i == 0, j == 0))
    def _init():
        acc_ref[...] = jnp.zeros_like(acc_ref)

    extra = None
    if mask_rows:
        # Intended (unclamped) row offset of this tile; overflow tiles whose
        # block index was clamped in the index_map end up fully masked here.
        row_start = (c * pl.num_programs(1) + i) * row_tile
        row_ids = row_start + lax.broadcasted_iota(jnp.int32, x_ref.shape, 0)
        extra = row_ids < rows
    if mask_cols:
        col_ids = j * col_tile + lax.broadcasted_iota(jnp.int32, x_ref.shape, 1)
        cmask = col_ids < cols
        extra = cmask if extra is None else jnp.logical_and(extra, cmask)

    loss = _asl_elementwise(x_ref[...], y_ref[...], extra_valid=extra, **hp)
    per_row = jnp.sum(loss, axis=1, keepdims=True)
    acc_ref[...] += jnp.sum(per_row, axis=0, keepdims=True)

    @pl.when(jnp.logical_and(i == pl.num_programs(1) - 1,
                             j == pl.num_programs(2) - 1))
    def _finalize():
        # Lane-dense (8,128) output tile per split; only element [0,0] is used.
        out_ref[...] = jnp.broadcast_to(acc_ref[...].reshape(1, 1, 1), out_ref.shape)


# --------------------------------------------------------------------------- #
# Wrapper
# --------------------------------------------------------------------------- #
def _vmem_capacity_bytes():
    try:
        return int(pltpu.get_tpu_info().vmem_capacity_bytes)
    except Exception:
        return 64 * 1024 * 1024     # conservative (v7x-sized) fallback


def asymmetric_loss(x, y, *, gamma_neg=4.0, gamma_pos=1.0, clip=0.05, eps=1e-6,
                    hard_labels=True, single_shot_bytes=2 * 1024 * 1024):
    """-sum over valid elements of the asymmetric focal loss; x.shape == y.shape.

    hard_labels=True (default) assumes binarized {0,1} targets (plus the NaN / 2
    "ignore" codes) and enables the fused-log / integer-pow fast path.  Pass
    hard_labels=False for soft targets (exact reference math).
    """
    assert x.shape == y.shape, "logits and targets must have the same shape"
    if x.size == 0:
        return jnp.float32(0.0)

    # Flatten to 2D with the class axis last (lane axis).  No padding and no
    # dtype cast: ragged tiles are masked in-kernel; narrow dtypes stream as-is.
    if x.ndim <= 1:
        x2, y2 = x.reshape(1, -1), y.reshape(1, -1)
    else:
        x2, y2 = x.reshape(-1, x.shape[-1]), y.reshape(-1, y.shape[-1])
    rows, cols = x2.shape

    hp = dict(gamma_neg=gamma_neg, gamma_pos=gamma_pos, clip=clip, eps=eps,
              hard_labels=hard_labels)

    itemsize = max(x2.dtype.itemsize, y2.dtype.itemsize)
    total_bytes = x2.size * x2.dtype.itemsize + y2.size * y2.dtype.itemsize

    if total_bytes <= single_shot_bytes:
        # Tiny problem: whole operands resident in VMEM, single invocation, no grid.
        out = pl.pallas_call(
            functools.partial(_asl_kernel_single, **hp),
            out_shape=jax.ShapeDtypeStruct((1, 1), jnp.float32),
            in_specs=[pl.BlockSpec(memory_space=pltpu.MemorySpace.VMEM),
                      pl.BlockSpec(memory_space=pltpu.MemorySpace.VMEM)],
            out_specs=pl.BlockSpec(memory_space=pltpu.MemorySpace.VMEM),
        )(x2, y2)
        return out[0, 0]

    # ------------------------- tiled / streamed path ------------------------- #
    vmem_cap = _vmem_capacity_bytes()
    small_vmem = vmem_cap <= 64 * 1024 * 1024        # v7x: 64 MiB; v5e/v6e: 128 MiB
    target_block_bytes = (2 if small_vmem else 4) * 1024 * 1024
    max_row_tile = 512 if small_vmem else 1024
    vmem_limit = (32 if small_vmem else 64) * 1024 * 1024

    # Sublane granule per dtype: f32 -> 8, bf16 -> 16, int8/fp8 -> 32.
    granule = max(8, 32 // max(itemsize, 1))

    # Column (lane) tiling: full class axis in one block when moderate, otherwise
    # a 128-aligned column grid axis (robustness for very wide class counts).
    col_tile_cap = 8192
    if cols <= col_tile_cap:
        col_tile, n_cb = cols, 1
    else:
        col_tile = col_tile_cap
        n_cb = _cdiv(cols, col_tile)

    # Adaptive row tile aiming at ~target_block_bytes per input block.
    if rows < granule:
        row_tile = rows                               # full dim bypasses granule rule
    else:
        row_tile = (target_block_bytes // (col_tile * itemsize)) // granule * granule
        row_tile = max(granule,
                       min(row_tile, max_row_tile, (rows // granule) * granule))
    nb = _cdiv(rows, row_tile)

    num_splits = 2 if nb >= 2 else 1                  # megacore split (2 TCs on v7x)
    inner = _cdiv(nb, num_splits)

    mask_rows = num_splits * inner * row_tile != rows
    mask_cols = n_cb * col_tile != cols

    def in_index_map(c, i, j):
        # Clamp overflow blocks to the last real block; the kernel masks them out.
        return (jnp.minimum(c * inner + i, nb - 1), j)

    in_spec = pl.BlockSpec((row_tile, col_tile), in_index_map)

    kernel = functools.partial(
        _asl_kernel_tiled, rows=rows, cols=cols, row_tile=row_tile,
        col_tile=col_tile, mask_rows=mask_rows, mask_cols=mask_cols, **hp)

    out = pl.pallas_call(
        kernel,
        out_shape=jax.ShapeDtypeStruct((num_splits, 8, 128), jnp.float32),
        grid=(num_splits, inner, n_cb),
        in_specs=[in_spec, in_spec],
        out_specs=pl.BlockSpec((1, 8, 128), lambda c, i, j: (c, 0, 0)),
        scratch_shapes=[pltpu.VMEM((1, 1), jnp.float32)],
        compiler_params=pltpu.CompilerParams(
            dimension_semantics=("parallel", "arbitrary", "arbitrary"),
            vmem_limit_bytes=vmem_limit),
    )(x2, y2)
    return -jnp.sum(out[:, 0, 0])


# --------------------------------------------------------------------------- #
# Pure-JAX reference (mirrors the PyTorch forward)
# --------------------------------------------------------------------------- #
def asl_reference(x, y, gamma_neg=4.0, gamma_pos=1.0, clip=0.05, eps=1e-6):
    x = x.astype(jnp.float32)
    y = y.astype(jnp.float32)
    valid = jnp.logical_and(~jnp.isnan(y), y != 2.0)
    y = jnp.where(valid, y, 0.0)
    xs_pos = jax.nn.sigmoid(x)
    xs_neg = jnp.minimum(1.0 - xs_pos + clip, 1.0)
    los_pos = y * jnp.log(jnp.maximum(xs_pos, eps))
    los_neg = (1.0 - y) * jnp.log(jnp.maximum(xs_neg, eps))
    loss = los_pos + los_neg
    pt = xs_pos * y + xs_neg * (1.0 - y)
    osg = gamma_pos * y + gamma_neg * (1.0 - y)
    loss = loss * jnp.power(1.0 - pt, osg)
    return -jnp.sum(jnp.where(valid, loss, 0.0))


if __name__ == "__main__":
    key = jax.random.PRNGKey(0)
    ks = jax.random.split(key, 16)

    def make_targets(kb, ki, kn, shape, soft=False):
        if soft:
            t = jax.random.uniform(kb, shape, jnp.float32)
        else:
            t = jax.random.bernoulli(kb, 0.3, shape).astype(jnp.float32)
        t = jnp.where(jax.random.uniform(ki, shape) < 0.05, 2.0, t)       # ignore label
        t = jnp.where(jax.random.uniform(kn, shape) < 0.05, jnp.nan, t)   # NaN targets
        return t

    RTOL, ATOL = 1e-2, 1e-2

    # 1) small lane-dense case (batch=8, classes=128) -> single-shot VMEM kernel
    B, C = 8, 128
    x1 = jax.random.normal(ks[0], (B, C), jnp.float32)
    y1 = make_targets(ks[1], ks[2], ks[3], (B, C))
    out1 = jax.block_until_ready(asymmetric_loss(x1, y1))
    ref1 = asl_reference(x1, y1)
    assert bool(jnp.isfinite(out1))
    assert jnp.allclose(out1, ref1, rtol=RTOL, atol=ATOL), (out1, ref1)

    # 2) larger unaligned f32 case -> streamed tiled path with megacore split,
    #    ragged-row masking and one clamped overflow tile (rows=700, tile=256/512).
    B2, C2 = 700, 2000
    x2 = jax.random.normal(ks[4], (B2, C2), jnp.float32)
    y2 = make_targets(ks[5], ks[6], ks[7], (B2, C2))
    out2 = jax.block_until_ready(asymmetric_loss(x2, y2))
    ref2 = asl_reference(x2, y2)
    assert bool(jnp.isfinite(out2))
    assert jnp.allclose(out2, ref2, rtol=RTOL, atol=ATOL), (out2, ref2)

    # 3) bf16 inputs streamed with no wrapper-side cast/pad (forced tiled path)
    B3, C3 = 300, 200
    x3 = jax.random.normal(ks[8], (B3, C3), jnp.float32).astype(jnp.bfloat16)
    y3 = make_targets(ks[9], ks[10], ks[11], (B3, C3)).astype(jnp.bfloat16)
    out3 = jax.block_until_ready(asymmetric_loss(x3, y3, single_shot_bytes=0))
    ref3 = asl_reference(x3.astype(jnp.float32), y3.astype(jnp.float32))
    assert bool(jnp.isfinite(out3))
    assert jnp.allclose(out3, ref3, rtol=RTOL, atol=ATOL), (out3, ref3)

    # 4) soft targets: exact (two-log, exp/log pow) path via hard_labels=False
    x4 = jax.random.normal(ks[12], (B, C), jnp.float32)
    y4 = make_targets(ks[13], ks[14], ks[15], (B, C), soft=True)
    out4 = jax.block_until_ready(asymmetric_loss(x4, y4, hard_labels=False))
    ref4 = asl_reference(x4, y4)
    assert bool(jnp.isfinite(out4))
    assert jnp.allclose(out4, ref4, rtol=RTOL, atol=ATOL), (out4, ref4)

    print("KERNEL_OK")
</pallas_src>

<mosaic_0001>
module attributes {stable_mosaic.version = 11 : i64} {
  func.func @_asl_kernel_single(%arg0: memref<8x128xf32, #tpu.memory_space<vmem>>, %arg1: memref<8x128xf32, #tpu.memory_space<vmem>>, %arg2: memref<1x1xf32, #tpu.memory_space<vmem>>) attributes {dimension_semantics = [], scalar_prefetch = 0 : i64, scratch_operands = 0 : i64, tpu.core_type = #tpu.core_type<tc>} {
    %c0 = arith.constant 0 : index
    %c0_0 = arith.constant 0 : index
    %0 = vector.load %arg0[%c0, %c0_0] : memref<8x128xf32, #tpu.memory_space<vmem>>, vector<8x128xf32>
    %c0_1 = arith.constant 0 : index
    %c0_2 = arith.constant 0 : index
    %1 = vector.load %arg1[%c0_1, %c0_2] : memref<8x128xf32, #tpu.memory_space<vmem>>, vector<8x128xf32>
    %2 = arith.cmpf oeq, %1, %1 : vector<8x128xf32>
    %cst = arith.constant 2.000000e+00 : f32
    %3 = vector.broadcast %cst : f32 to vector<8x128xf32>
    %4 = arith.cmpf one, %1, %3 : vector<8x128xf32>
    %5 = arith.andi %2, %4 : vector<8x128xi1>
    %cst_3 = arith.constant 0.000000e+00 : f32
    %6 = vector.broadcast %cst_3 : f32 to vector<8x128xf32>
    %7 = arith.select %5, %1, %6 : vector<8x128xi1>, vector<8x128xf32>
    %cst_4 = arith.constant 0.000000e+00 : f32
    %8 = vector.broadcast %cst_4 : f32 to vector<8x128xf32>
    %9 = arith.subf %8, %0 : vector<8x128xf32>
    %10 = math.exp %9 : vector<8x128xf32>
    %cst_5 = arith.constant 1.000000e+00 : f32
    %11 = vector.broadcast %cst_5 : f32 to vector<8x128xf32>
    %12 = arith.addf %11, %10 : vector<8x128xf32>
    %13 = tpu.reciprocal %12 {approx = true} : vector<8x128xf32> -> vector<8x128xf32>
    %cst_6 = arith.constant 1.000000e+00 : f32
    %14 = vector.broadcast %cst_6 : f32 to vector<8x128xf32>
    %15 = arith.subf %14, %13 : vector<8x128xf32>
    %cst_7 = arith.constant 5.000000e-02 : f32
    %16 = vector.broadcast %cst_7 : f32 to vector<8x128xf32>
    %17 = arith.addf %15, %16 : vector<8x128xf32>
    %cst_8 = arith.constant 1.000000e+00 : f32
    %18 = vector.broadcast %cst_8 : f32 to vector<8x128xf32>
    %19 = arith.minimumf %17, %18 : vector<8x128xf32>
    %cst_9 = arith.constant 5.000000e-01 : f32
    %20 = vector.broadcast %cst_9 : f32 to vector<8x128xf32>
    %21 = arith.cmpf ogt, %7, %20 : vector<8x128xf32>
    %22 = arith.select %21, %13, %19 : vector<8x128xi1>, vector<8x128xf32>
    %cst_10 = arith.constant 9.99999997E-7 : f32
    %23 = vector.broadcast %cst_10 : f32 to vector<8x128xf32>
    %24 = arith.maximumf %22, %23 : vector<8x128xf32>
    %25 = math.log %24 : vector<8x128xf32>
    %cst_11 = arith.constant 1.000000e+00 : f32
    %26 = vector.broadcast %cst_11 : f32 to vector<8x128xf32>
    %27 = arith.subf %26, %22 : vector<8x128xf32>
    %28 = arith.mulf %27, %27 : vector<8x128xf32>
    %29 = arith.mulf %28, %28 : vector<8x128xf32>
    %30 = arith.select %21, %27, %29 : vector<8x128xi1>, vector<8x128xf32>
    %31 = arith.mulf %25, %30 : vector<8x128xf32>
    %cst_12 = arith.constant 0.000000e+00 : f32
    %32 = vector.broadcast %cst_12 : f32 to vector<8x128xf32>
    %33 = arith.select %5, %31, %32 : vector<8x128xi1>, vector<8x128xf32>
    %cst_13 = arith.constant dense<0.000000e+00> : vector<8xf32>
    %34 = vector.multi_reduction <add>, %33, %cst_13 [1] : vector<8x128xf32> to vector<8xf32>
    %35 = vector.shape_cast %34 : vector<8xf32> to vector<8x1xf32>
    %cst_14 = arith.constant dense<0.000000e+00> : vector<1xf32>
    %36 = vector.multi_reduction <add>, %35, %cst_14 [0] : vector<8x1xf32> to vector<1xf32>
    %37 = vector.shape_cast %36 : vector<1xf32> to vector<1x1xf32>
    %cst_15 = arith.constant 0.000000e+00 : f32
    %38 = vector.broadcast %cst_15 : f32 to vector<1x1xf32>
    %39 = arith.subf %38, %37 : vector<1x1xf32>
    %c0_16 = arith.constant 0 : index
    %c0_17 = arith.constant 0 : index
    %40 = vector.load %arg2[%c0_16, %c0_17] : memref<1x1xf32, #tpu.memory_space<vmem>>, vector<1x1xf32>
    tpu.vector_store %arg2[%c0_16, %c0_17], %39 {strides = array<i32>} : memref<1x1xf32, #tpu.memory_space<vmem>>, vector<1x1xf32>,
    return
  }
}

</mosaic_0001>

<bundles_post_ra>
// kernel: tpu_custom_call.1
= control target key start
LH: loop header
LB: loop body
LE: loop exit
PB: predicated region body
PF: predicated region fallthrough
CT: control target
= control target key end

     0   :  { %7 = vsyncpa [#allocation3], 0  ;;  %s231_s0 = inlined_call_operand.hbm [shape: f32[8,128], index: 0, kind: input, shape index: {}]   ;;  %s232_s1 = inlined_call_operand.hbm [shape: f32[8,128], index: 1, kind: input, shape index: {}]   ;;  %s233_s2 = inlined_call_operand.hbm [shape: f32[1,1], index: 2, kind: output, shape index: {}]  }
   0x1   :  { %8 = vsyncpa [#allocation6], 0 }
   0x2   :  { %9 = vsyncpa [#allocation4], 0  ;;  %s169_s9 = smov [#allocation2]   ;;  %s170_s11 = smov [#allocation5]  }
   0x3   :  { %s16_s10 = sshll.u32 %s169_s9, 4  ;;  %s26_s12 = sshll.u32 %s170_s11, 4  ;;  %s17_s10 = int_to_ptr.vmem [resolvable:$true] %s16_s10  ;;  %s27_s12 = int_to_ptr.vmem [resolvable:$true] %s26_s12 }
   0x4   :  { %s97_s15 = scalar_lea.hbm %s231_s0, 128 }
   0x5   :  { %p98_p0 = scmp.ne.s32.totalorder %s231_s0, %s97_s15  ;;  %p101_p1 = scmp.lt.u32.totalorder %s97_s15, %s231_s0 }
   0x7   :  { %p103_p2 = pnand %p101_p1, %p98_p0 }
   0x9   :  { %106 = shalt.err (!%p103_p2)
}
   0xa   :  { %s107_s20 = scalar_lea.vmem %s17_s10, 128  ;;  %p112_p4 = scmp.lt.s32.totalorder %s17_s10, %s17_s10 }
   0xb   :  { %p108_p3 = scmp.ne.s32.totalorder %s17_s10, %s107_s20  ;;  %p113_p5 = scmp.lt.s32.totalorder %s107_s20, %s107_s20 }
   0xd   :  { %p114_p6 = por %p113_p5, %p112_p4 }
   0xf   :  { %p115_p7 = pnand %p114_p6, %p108_p3 }
  0x11   :  { %118 = shalt.err (!%p115_p7)
}
  0x12   :  { %19 = dma.hbm_to_vmem [thread:$0]  %s231_s0, 128, %s17_s10, [#allocation3]  }
  0x13   :  { %s119_s25 = scalar_lea.hbm %s232_s1, 128 }
  0x14   :  { %p120_p8 = scmp.ne.s32.totalorder %s232_s1, %s119_s25  ;;  %p123_p9 = scmp.lt.u32.totalorder %s119_s25, %s232_s1 }
  0x16   :  { %p125_p10 = pnand %p123_p9, %p120_p8 }
  0x18   :  { %128 = shalt.err (!%p125_p10)
}
  0x19   :  { %s129_s30 = scalar_lea.vmem %s27_s12, 128  ;;  %p134_p12 = scmp.lt.s32.totalorder %s27_s12, %s27_s12 }
  0x1a   :  { %p130_p11 = scmp.ne.s32.totalorder %s27_s12, %s129_s30  ;;  %p135_p13 = scmp.lt.s32.totalorder %s129_s30, %s129_s30 }
  0x1c   :  { %p136_p0 = por %p135_p13, %p134_p12 }
  0x1e   :  { %p137_p1 = pnand %p136_p0, %p130_p11 }
  0x20   :  { %140 = shalt.err (!%p137_p1)
}
  0x21   :  { %29 = dma.hbm_to_vmem [thread:$0]  %s232_s1, 128, %s27_s12, [#allocation6]  }
  0x22   :  { %163 = dma.done.wait [#allocation3], 128  }
  0x23   :  { %164 = vsyncadd [#allocation3], 4294967168 }
  0x24   :  { %165 = dma.done.wait [#allocation6], 128  }
  0x25   :  { %166 = vsyncadd [#allocation6], 4294967168  ;;  %v36_v0 = vld [vmem:[#allocation2] sm:$0xff]  ;;  %v37_v5 = vld [vmem:[#allocation5] sm:$0xff]  ;;  %s171_s1 = smov [#allocation7]   ;;  %vm70_vm4 = vcmask 0  }
  0x26   :  { %v42_v1 = vsub.f32 0.0, %v36_v0  ;;  %vm38_vm0 = vcmp.eq.f32.partialorder %v37_v5, %v37_v5  ;;  %vm39_vm1 = vcmp.ne.f32.partialorder %v37_v5, 2.0  ;;  %s78_s4 = sshll.u32 %s171_s1, 4  ;;  %s79_s4 = int_to_ptr.vmem [resolvable:$true] %s78_s4 }
  0x27   :  { %vm211_vm2 = vmand %vm38_vm0, %vm39_vm1  ;;  %s141_s5 = scalar_lea.vmem %s79_s4, 16  ;;  %s145_s6 = scalar_lea.vmem %s79_s4, 32 }
  0x28   :  { %v43_v2 = vmul.f32 1.442695, %v42_v1  ;;  %v41_v8 = vsel %vm211_vm2, %v37_v5, 0.0  ;;  %p142_p2 = scmp.ne.s32.totalorder %s79_s4, %s141_s5  ;;  %p146_p3 = scmp.lt.s32.totalorder %s79_s4, %s79_s4 }
  0x29   :  { %vm50_vm3 = vcmp.gt.f32.partialorder %v41_v8, 0.5  ;;  %p147_p4 = scmp.lt.s32.totalorder %s145_s6, %s141_s5 }
  0x2a   :  { %91 = vpow2.f32 %v43_v2 }
  0x2b   :  { %p148_p5 = por %p147_p4, %p146_p3 }
  0x2d   :  { %p149_p6 = pnand %p148_p5, %p142_p2 }
  0x34   :  { %v92_v3 = vpop.eup %91 }
  0x35   :  { %v45_v4 = vadd.f32 1.0, %v92_v3 }
  0x37   :  { %93 = vrcp.f32 %v45_v4 }
  0x41   :  { %v94_v7 = vpop.eup %93 }
  0x42   :  { %v47_v9 = vsub.f32 1.0, %v94_v7 }
  0x44   :  { %v48_v10 = vadd.f32 0.05, %v47_v9 }
  0x46   :  { %v49_v11 = vmin.f32 %v48_v10, 1.0 }
  0x48   :  { %v51_v12 = vsel %vm50_vm3, %v94_v7, %v49_v11 }
  0x49   :  { %v52_v13 = vmax.f32 %v51_v12, 1e-06  ;;  %v55_v14 = vsub.f32 1.0, %v51_v12 }
  0x4b   :  { %95 = vlog2.f32 %v52_v13  ;;  %v56_v15 = vmul.f32 %v55_v14, %v55_v14 }
  0x4d   :  { %v57_v16 = vmul.f32 %v56_v15, %v56_v15 }
  0x4f   :  { %v58_v18 = vsel %vm50_vm3, %v55_v14, %v57_v16 }
  0x55   :  { %v96_v17 = vpop.eup %95 }
  0x56   :  { %v54_v19 = vmul.f32 0.6931472, %v96_v17 }
  0x58   :  { %v59_v20 = vmul.f32 %v58_v18, %v54_v19 }
  0x5a   :  { %v60_v21 = vsel %vm211_vm2, %v59_v20, 0.0 }
  0x5b   :  { %61 = vadd.xlane.f32.xlu0 %v60_v21 }
  0xe8   :  { %v62_v22 = vpop.xlane.xlu0 %61 }
  0xe9   :  { %v63_v23 = vrot.slane %v62_v22, 4 }
  0xeb   :  { %v64_v24 = vadd.f32 %v63_v23, %v62_v22 }
  0xed   :  { %v65_v25 = vrot.slane %v64_v24, 2 }
  0xef   :  { %v66_v26 = vadd.f32 %v65_v25, %v64_v24 }
  0xf1   :  { %v67_v27 = vrot.slane %v66_v26, 1 }
  0xf3   :  { %v68_v28 = vadd.f32 %v67_v27, %v66_v26 }
  0xf5   :  { %v69_v29 = vsub.f32 0.0, %v68_v28 }
  0xf7   :  { %71 = vst.msk [vmem:[#allocation7] sm:$0x1] %vm70_vm4, %v69_v29 }
  0xf8   :  { %152 = shalt.err (!%p149_p6)
}
  0xf9   :  { %s153_s9 = scalar_lea.hbm %s233_s2, 16 }
  0xfa   :  { %p154_p7 = scmp.ne.s32.totalorder %s233_s2, %s153_s9  ;;  %p157_p8 = scmp.lt.u32.totalorder %s153_s9, %s233_s2 }
  0xfc   :  { %p159_p9 = pnand %p157_p8, %p154_p7 }
  0xfe   :  { %162 = shalt.err (!%p159_p9)
}
  0xff   :  { %81 = dma.vmem_to_hbm [thread:$0]  %s79_s4, 16, %s233_s2, [#allocation4]  }
 0x100   :  { %167 = dma.done.wait [#allocation4], 16  }
 0x101   :  { %168 = vsyncadd [#allocation4], 4294967280 }
 0x102   :  { %85 = vsyncpa [#allocation3], 1 }
 0x103   :  { %86 = vsyncpa [#allocation6], 1 }
 0x104   :  { %87 = vsyncpa [#allocation4], 1 }

</bundles_post_ra>
